<compile_context>
chip_gen: v6e
topology: v6e:2x2x1
jax: 0.10.0
libtpu: 0.0.40
codegen_flags: <defaults>
</compile_context>

<pallas_src>
import jax
import jax.numpy as jnp
from jax.experimental import pallas as pl
from jax.experimental.pallas import tpu as pltpu

N_BINARY = 10
N_CONTINUOUS = 90
N_FEAT = N_BINARY + N_CONTINUOUS      # 100
EMB_DIM = 4
H1, H2 = 20, 10
EPS = 1e-5

MAX_BATCH_TILE = 16384                # lanes (samples) per grid step; (16384,100) f32 = 6.25 MiB
LANES = 128


def _layernorm_relu_cols(h, gamma, beta):
    """h: (F, TB); per-column (per-sample) LayerNorm over the F features, fused with ReLU."""
    mu = jnp.mean(h, axis=0, keepdims=True)          # (1, TB)
    d = h - mu                                       # computed once, reused
    var = jnp.mean(d * d, axis=0, keepdims=True)     # (1, TB)
    r = jax.lax.rsqrt(var + EPS)                     # EUP
    return jnp.maximum(d * r * gamma + beta, 0.0)


def _layernorm_rows(h, gamma, beta):
    mu = jnp.mean(h, axis=-1, keepdims=True)
    var = jnp.mean(jnp.square(h - mu), axis=-1, keepdims=True)
    return (h - mu) * jax.lax.rsqrt(var + EPS) * gamma + beta


# --------------------------------------------------------------------------------------
# Pallas kernel: one batch tile per grid step; x arrives in natural (TB, 100) f32 layout.
# --------------------------------------------------------------------------------------
def simple_nn_kernel(x_ref, w1_ref, b1_ref, g1_ref, be1_ref,
                     w2_ref, b2_ref, g2_ref, be2_ref,
                     w3_ref, b3_ref, out_ref):
    x = x_ref[...]                                                    # (TB, 100) f32

    # In-kernel preprocessing of the 10 binary columns: torch's .long() truncates; under the
    # 0/1 contract floor+clip is exact. Lane-mask keeps everything full-width VPU work.
    col = jax.lax.broadcasted_iota(jnp.int32, x.shape, dimension=1)
    xb = jnp.clip(jnp.floor(x), 0.0, 1.0)
    x = jnp.where(col < N_BINARY, xb, x)
    x = x.astype(w1_ref.dtype)                                        # bf16 for the MXU

    # layer1 (embedding folded into w1/b1): contract features-vs-features -> (20, TB) f32,
    # i.e. the batch-on-lanes orientation comes straight out of the MXU (no host transpose).
    h = jax.lax.dot_general(w1_ref[...], x, (((1,), (1,)), ((), ())),
                            preferred_element_type=jnp.float32) + b1_ref[...]
    h = _layernorm_relu_cols(h, g1_ref[...], be1_ref[...])
    # dropout1: identity (eval mode)

    # layer2 -> (10, TB)
    h = jnp.dot(w2_ref[...], h.astype(w2_ref.dtype),
                preferred_element_type=jnp.float32) + b2_ref[...]
    h = _layernorm_relu_cols(h, g2_ref[...], be2_ref[...])
    # dropout2: identity (eval mode)

    # layer3 -> (1, TB) lane-dense output slab
    out_ref[...] = (jnp.dot(w3_ref[...], h.astype(w3_ref.dtype),
                            preferred_element_type=jnp.float32) + b3_ref[...])


# --------------------------------------------------------------------------------------
# Host-side parameter folding (exact algebra, f32) + layout plumbing.
# --------------------------------------------------------------------------------------
def _fold_and_transpose_params(params, compute_dtype=jnp.bfloat16):
    emb = params["emb"]                                   # (2, EMB_DIM)
    d = emb[1] - emb[0]                                   # (EMB_DIM,)
    w1 = params["w1"]                                     # (130, 20)
    w1a = w1[: N_BINARY * EMB_DIM]                        # (40, 20)
    w1b = w1[N_BINARY * EMB_DIM:]                         # (90, 20)

    # emb[v] = emb[0] + v * (emb[1]-emb[0])  for v in {0,1}  ->  fold into layer-1 weights/bias.
    w1a_folded = (w1a.reshape(N_BINARY, EMB_DIM, H1) * d[None, :, None]).sum(axis=1)  # (10, 20)
    b1_folded = params["b1"][0] + jnp.tile(emb[0], N_BINARY) @ w1a                    # (20,)
    w1f = jnp.concatenate([w1a_folded, w1b], axis=0)                                  # (100, 20)

    return dict(
        w1t=w1f.T.astype(compute_dtype),                          # (20, 100)
        b1=b1_folded.reshape(H1, 1).astype(jnp.float32),
        g1=params["g1"].reshape(H1, 1).astype(jnp.float32),
        be1=params["be1"].reshape(H1, 1).astype(jnp.float32),
        w2t=params["w2"].T.astype(compute_dtype),                 # (10, 20)
        b2=params["b2"].reshape(H2, 1).astype(jnp.float32),
        g2=params["g2"].reshape(H2, 1).astype(jnp.float32),
        be2=params["be2"].reshape(H2, 1).astype(jnp.float32),
        w3t=params["w3"].T.astype(compute_dtype),                 # (1, 10)
        b3=params["b3"].reshape(1, 1).astype(jnp.float32),
    )


def _select_batch_tile(batch, max_batch_tile):
    """Multiple of 128 lanes; capped so large batches yield >= 2 grid steps (v7x megacore)."""
    b_ceil = ((batch + LANES - 1) // LANES) * LANES
    half = ((b_ceil // 2 + LANES - 1) // LANES) * LANES
    return max(LANES, min(max_batch_tile, half))


def simple_nn_forward(x, params, *, max_batch_tile=MAX_BATCH_TILE,
                      compute_dtype=jnp.bfloat16):
    """x: (B, 100) float32; first 10 columns are 0/1 binary flags. Returns (B,) float32."""
    B = x.shape[0]
    ops = _fold_and_transpose_params(params, compute_dtype)

    tb = _select_batch_tile(B, max_batch_tile)
    num_tiles = pl.cdiv(B, tb)
    b_pad = num_tiles * tb
    # x is passed as-is (single f32 read). The last partial tile reads unspecified rows; every
    # column (sample) is processed independently, the tail is sliced off, and the output array
    # is allocated at the padded size so all output stores are in-bounds.

    flops = 2 * b_pad * (N_FEAT * H1 + H1 * H2 + H2 * 1)
    bytes_accessed = (b_pad * N_FEAT * 4                            # single f32 read of x
                      + b_pad * 4                                   # f32 output slab
                      + (N_FEAT * H1 + H1 * H2 + H2) * 2            # bf16 weights
                      + (3 * H1 + 3 * H2 + 1) * 4)                  # biases / LN params
    cost = pl.CostEstimate(flops=flops, transcendentals=2 * b_pad,
                           bytes_accessed=bytes_accessed)

    resident = lambda shape: pl.BlockSpec(shape, lambda i: (0, 0))   # VMEM-resident params
    in_specs = [
        # x streamed over the batch grid in natural layout (no host transpose/pad/cast).
        # If DMA is still exposed after tile enlargement, add pipeline_mode=pl.Buffered(3).
        pl.BlockSpec((tb, N_FEAT), lambda i: (i, 0)),
        resident((H1, N_FEAT)),                                      # w1t
        resident((H1, 1)), resident((H1, 1)), resident((H1, 1)),     # b1, g1, be1
        resident((H2, H1)),                                          # w2t
        resident((H2, 1)), resident((H2, 1)), resident((H2, 1)),     # b2, g2, be2
        resident((1, H2)),                                           # w3t
        resident((1, 1)),                                            # b3
    ]

    out = pl.pallas_call(
        simple_nn_kernel,
        out_shape=jax.ShapeDtypeStruct((1, b_pad), jnp.float32),
        grid=(num_tiles,),
        in_specs=in_specs,
        out_specs=pl.BlockSpec((1, tb), lambda i: (0, i)),
        compiler_params=pltpu.CompilerParams(
            dimension_semantics=("parallel",),
            vmem_limit_bytes=48 * 1024 * 1024,      # v7x-safe (64 MiB physical); ~20 MiB used
        ),
        cost_estimate=cost,
    )(x, ops["w1t"], ops["b1"], ops["g1"], ops["be1"],
      ops["w2t"], ops["b2"], ops["g2"], ops["be2"],
      ops["w3t"], ops["b3"])

    return out[0, :B]                                   # matches torch .squeeze()


# --------------------------------------------------------------------------------------
# References.
# --------------------------------------------------------------------------------------
def reference_forward(x, params):
    """Pure-JAX float32 reference mirroring the PyTorch forward (eval mode)."""
    xb = x[:, :N_BINARY].astype(jnp.int32)
    xc = x[:, N_BINARY:]
    emb = params["emb"][xb].reshape(x.shape[0], -1)               # (B, 40)
    h = jnp.concatenate([emb, xc], axis=1) @ params["w1"] + params["b1"][0]
    h = _layernorm_rows(h, params["g1"][0], params["be1"][0])
    h = jnp.maximum(h, 0.0)
    h = h @ params["w2"] + params["b2"][0]
    h = _layernorm_rows(h, params["g2"][0], params["be2"][0])
    h = jnp.maximum(h, 0.0)
    h = h @ params["w3"] + params["b3"][0]
    return h.squeeze(-1)


def matched_reference_forward(x, params, compute_dtype=jnp.bfloat16):
    """Plain-JAX replica of the exact kernel math (folded weights, bf16 matmul inputs)."""
    ops = _fold_and_transpose_params(params, compute_dtype)
    xb = jnp.clip(jnp.floor(x[:, :N_BINARY]), 0.0, 1.0)
    xf = jnp.concatenate([xb, x[:, N_BINARY:]], axis=1).astype(compute_dtype)   # (B, 100)
    h = jax.lax.dot_general(ops["w1t"], xf, (((1,), (1,)), ((), ())),
                            preferred_element_type=jnp.float32) + ops["b1"]
    h = _layernorm_relu_cols(h, ops["g1"], ops["be1"])
    h = jnp.dot(ops["w2t"], h.astype(compute_dtype),
                preferred_element_type=jnp.float32) + ops["b2"]
    h = _layernorm_relu_cols(h, ops["g2"], ops["be2"])
    h = jnp.dot(ops["w3t"], h.astype(compute_dtype),
                preferred_element_type=jnp.float32) + ops["b3"]
    return h[0]


def init_params(key):
    ks = jax.random.split(key, 8)
    total_in = N_BINARY * EMB_DIM + N_CONTINUOUS
    return {
        "emb": jax.random.normal(ks[0], (2, EMB_DIM), jnp.float32),
        "w1": jax.random.normal(ks[1], (total_in, H1), jnp.float32) * 0.1,
        "b1": jax.random.normal(ks[2], (1, H1), jnp.float32) * 0.1,
        "g1": jnp.ones((1, H1), jnp.float32),
        "be1": jnp.zeros((1, H1), jnp.float32),
        "w2": jax.random.normal(ks[3], (H1, H2), jnp.float32) * 0.1,
        "b2": jax.random.normal(ks[4], (1, H2), jnp.float32) * 0.1,
        "g2": jnp.ones((1, H2), jnp.float32),
        "be2": jnp.zeros((1, H2), jnp.float32),
        "w3": jax.random.normal(ks[5], (H2, 1), jnp.float32) * 0.1,
        "b3": jax.random.normal(ks[6], (1, 1), jnp.float32) * 0.1,
    }


if __name__ == "__main__":
    key = jax.random.PRNGKey(0)
    k_bin, k_cont, k_param = jax.random.split(key, 3)

    B = 8
    x_binary = jax.random.bernoulli(k_bin, 0.5, (B, N_BINARY)).astype(jnp.float32)
    x_continuous = jax.random.normal(k_cont, (B, N_CONTINUOUS), jnp.float32)
    x = jnp.concatenate([x_binary, x_continuous], axis=1)          # (8, 100)

    params = init_params(k_param)

    out = jax.block_until_ready(simple_nn_forward(x, params))
    assert out.shape == (B,), out.shape

    # Exact-math check: same folded-weight / bf16 compute path in plain JAX.
    ref_matched = jax.block_until_ready(matched_reference_forward(x, params))
    assert jnp.allclose(out, ref_matched, atol=2e-3, rtol=2e-3), (out, ref_matched)

    # Semantics check vs the float32, gather-based PyTorch-style forward; the only divergence
    # is bfloat16 quantization of x / weights on the MXU path.
    ref_f32 = jax.block_until_ready(reference_forward(x, params))
    assert jnp.allclose(out, ref_f32, atol=1e-1, rtol=5e-2), (out, ref_f32)

    print("KERNEL_OK")
</pallas_src>

<mosaic_0001>
module attributes {stable_mosaic.version = 11 : i64} {
  func.func @simple_nn_kernel(%arg0: i32, %arg1: memref<128x100xf32, #tpu.memory_space<vmem>>, %arg2: memref<20x100xbf16, #tpu.memory_space<vmem>>, %arg3: memref<20x1xf32, #tpu.memory_space<vmem>>, %arg4: memref<20x1xf32, #tpu.memory_space<vmem>>, %arg5: memref<20x1xf32, #tpu.memory_space<vmem>>, %arg6: memref<10x20xbf16, #tpu.memory_space<vmem>>, %arg7: memref<10x1xf32, #tpu.memory_space<vmem>>, %arg8: memref<10x1xf32, #tpu.memory_space<vmem>>, %arg9: memref<10x1xf32, #tpu.memory_space<vmem>>, %arg10: memref<1x10xbf16, #tpu.memory_space<vmem>>, %arg11: memref<1x1xf32, #tpu.memory_space<vmem>>, %arg12: memref<1x128xf32, #tpu.memory_space<vmem>>) attributes {dimension_semantics = [#tpu.dimension_semantics<parallel>], iteration_bounds = array<i64: 1>, scalar_prefetch = 0 : i64, scratch_operands = 0 : i64, tpu.core_type = #tpu.core_type<tc>, window_params = [{transform_indices = @transform_0, window_bounds = array<i64: 128, 100>}, {pipeline_mode = #tpu.pipeline_mode<synchronous>, transform_indices = @transform_1, window_bounds = array<i64: 20, 100>}, {pipeline_mode = #tpu.pipeline_mode<synchronous>, transform_indices = @transform_2, window_bounds = array<i64: 20, 1>}, {pipeline_mode = #tpu.pipeline_mode<synchronous>, transform_indices = @transform_3, window_bounds = array<i64: 20, 1>}, {pipeline_mode = #tpu.pipeline_mode<synchronous>, transform_indices = @transform_4, window_bounds = array<i64: 20, 1>}, {pipeline_mode = #tpu.pipeline_mode<synchronous>, transform_indices = @transform_5, window_bounds = array<i64: 10, 20>}, {pipeline_mode = #tpu.pipeline_mode<synchronous>, transform_indices = @transform_6, window_bounds = array<i64: 10, 1>}, {pipeline_mode = #tpu.pipeline_mode<synchronous>, transform_indices = @transform_7, window_bounds = array<i64: 10, 1>}, {pipeline_mode = #tpu.pipeline_mode<synchronous>, transform_indices = @transform_8, window_bounds = array<i64: 10, 1>}, {pipeline_mode = #tpu.pipeline_mode<synchronous>, transform_indices = @transform_9, window_bounds = array<i64: 1, 10>}, {pipeline_mode = #tpu.pipeline_mode<synchronous>, transform_indices = @transform_10, window_bounds = array<i64: 1, 1>}, {transform_indices = @transform_11, window_bounds = array<i64: 1, 128>}]} {
    %c0 = arith.constant 0 : index
    %c0_0 = arith.constant 0 : index
    %0 = vector.load %arg1[%c0, %c0_0] : memref<128x100xf32, #tpu.memory_space<vmem>>, vector<128x100xf32>
    %1 = tpu.iota {dimensions = array<i32: 1>} : vector<128x100xi32>
    %2 = math.floor %0 : vector<128x100xf32>
    %cst = arith.constant 0.000000e+00 : f32
    %cst_1 = arith.constant 1.000000e+00 : f32
    %3 = vector.broadcast %cst : f32 to vector<128x100xf32>
    %4 = arith.maximumf %3, %2 : vector<128x100xf32>
    %5 = vector.broadcast %cst_1 : f32 to vector<128x100xf32>
    %6 = arith.minimumf %5, %4 : vector<128x100xf32>
    %c10_i32 = arith.constant 10 : i32
    %7 = vector.broadcast %c10_i32 : i32 to vector<128x100xi32>
    %8 = arith.cmpi slt, %1, %7 : vector<128x100xi32>
    %9 = arith.select %8, %6, %0 : vector<128x100xi1>, vector<128x100xf32>
    %10 = arith.truncf %9 : vector<128x100xf32> to vector<128x100xbf16>
    %c0_2 = arith.constant 0 : index
    %c0_3 = arith.constant 0 : index
    %11 = vector.load %arg2[%c0_2, %c0_3] : memref<20x100xbf16, #tpu.memory_space<vmem>>, vector<20x100xbf16>
    %cst_4 = arith.constant dense<0.000000e+00> : vector<20x128xf32>
    %12 = tpu.matmul %11, %10, %cst_4 {dimension_numbers = #tpu.dot_dimension_numbers<[1], [1], [0], [0], [0, 0, 1, 0], [], []>} : vector<20x100xbf16>, vector<128x100xbf16>, vector<20x128xf32> -> vector<20x128xf32>
    %c0_5 = arith.constant 0 : index
    %c0_6 = arith.constant 0 : index
    %13 = vector.load %arg3[%c0_5, %c0_6] : memref<20x1xf32, #tpu.memory_space<vmem>>, vector<20x1xf32>
    %14 = vector.broadcast %13 : vector<20x1xf32> to vector<20x128xf32>
    %15 = arith.addf %12, %14 : vector<20x128xf32>
    %c0_7 = arith.constant 0 : index
    %c0_8 = arith.constant 0 : index
    %16 = vector.load %arg4[%c0_7, %c0_8] : memref<20x1xf32, #tpu.memory_space<vmem>>, vector<20x1xf32>
    %c0_9 = arith.constant 0 : index
    %c0_10 = arith.constant 0 : index
    %17 = vector.load %arg5[%c0_9, %c0_10] : memref<20x1xf32, #tpu.memory_space<vmem>>, vector<20x1xf32>
    %cst_11 = arith.constant dense<0.000000e+00> : vector<128xf32>
    %18 = vector.multi_reduction <add>, %15, %cst_11 [0] : vector<20x128xf32> to vector<128xf32>
    %19 = vector.shape_cast %18 : vector<128xf32> to vector<1x128xf32>
    %cst_12 = arith.constant 2.000000e+01 : f32
    %20 = vector.broadcast %cst_12 : f32 to vector<1x128xf32>
    %21 = arith.divf %19, %20 : vector<1x128xf32>
    %22 = vector.broadcast %21 : vector<1x128xf32> to vector<20x128xf32>
    %23 = arith.subf %15, %22 : vector<20x128xf32>
    %24 = arith.mulf %23, %23 : vector<20x128xf32>
    %cst_13 = arith.constant dense<0.000000e+00> : vector<128xf32>
    %25 = vector.multi_reduction <add>, %24, %cst_13 [0] : vector<20x128xf32> to vector<128xf32>
    %26 = vector.shape_cast %25 : vector<128xf32> to vector<1x128xf32>
    %cst_14 = arith.constant 2.000000e+01 : f32
    %27 = vector.broadcast %cst_14 : f32 to vector<1x128xf32>
    %28 = arith.divf %26, %27 : vector<1x128xf32>
    %cst_15 = arith.constant 9.99999974E-6 : f32
    %29 = vector.broadcast %cst_15 : f32 to vector<1x128xf32>
    %30 = arith.addf %28, %29 : vector<1x128xf32>
    %31 = math.rsqrt %30 : vector<1x128xf32>
    %32 = vector.broadcast %31 : vector<1x128xf32> to vector<20x128xf32>
    %33 = arith.mulf %23, %32 : vector<20x128xf32>
    %34 = vector.broadcast %16 : vector<20x1xf32> to vector<20x128xf32>
    %35 = arith.mulf %33, %34 : vector<20x128xf32>
    %36 = vector.broadcast %17 : vector<20x1xf32> to vector<20x128xf32>
    %37 = arith.addf %35, %36 : vector<20x128xf32>
    %cst_16 = arith.constant 0.000000e+00 : f32
    %38 = vector.broadcast %cst_16 : f32 to vector<20x128xf32>
    %39 = arith.maximumf %37, %38 : vector<20x128xf32>
    %c0_17 = arith.constant 0 : index
    %c0_18 = arith.constant 0 : index
    %40 = vector.load %arg6[%c0_17, %c0_18] : memref<10x20xbf16, #tpu.memory_space<vmem>>, vector<10x20xbf16>
    %41 = arith.truncf %39 : vector<20x128xf32> to vector<20x128xbf16>
    %cst_19 = arith.constant dense<0.000000e+00> : vector<10x128xf32>
    %42 = tpu.matmul %40, %41, %cst_19 {dimension_numbers = #tpu.dot_dimension_numbers<[1], [0], [0], [1], [0, 0, 1, 1], [], []>} : vector<10x20xbf16>, vector<20x128xbf16>, vector<10x128xf32> -> vector<10x128xf32>
    %c0_20 = arith.constant 0 : index
    %c0_21 = arith.constant 0 : index
    %43 = vector.load %arg7[%c0_20, %c0_21] : memref<10x1xf32, #tpu.memory_space<vmem>>, vector<10x1xf32>
    %44 = vector.broadcast %43 : vector<10x1xf32> to vector<10x128xf32>
    %45 = arith.addf %42, %44 : vector<10x128xf32>
    %c0_22 = arith.constant 0 : index
    %c0_23 = arith.constant 0 : index
    %46 = vector.load %arg8[%c0_22, %c0_23] : memref<10x1xf32, #tpu.memory_space<vmem>>, vector<10x1xf32>
    %c0_24 = arith.constant 0 : index
    %c0_25 = arith.constant 0 : index
    %47 = vector.load %arg9[%c0_24, %c0_25] : memref<10x1xf32, #tpu.memory_space<vmem>>, vector<10x1xf32>
    %cst_26 = arith.constant dense<0.000000e+00> : vector<128xf32>
    %48 = vector.multi_reduction <add>, %45, %cst_26 [0] : vector<10x128xf32> to vector<128xf32>
    %49 = vector.shape_cast %48 : vector<128xf32> to vector<1x128xf32>
    %cst_27 = arith.constant 1.000000e+01 : f32
    %50 = vector.broadcast %cst_27 : f32 to vector<1x128xf32>
    %51 = arith.divf %49, %50 : vector<1x128xf32>
    %52 = vector.broadcast %51 : vector<1x128xf32> to vector<10x128xf32>
    %53 = arith.subf %45, %52 : vector<10x128xf32>
    %54 = arith.mulf %53, %53 : vector<10x128xf32>
    %cst_28 = arith.constant dense<0.000000e+00> : vector<128xf32>
    %55 = vector.multi_reduction <add>, %54, %cst_28 [0] : vector<10x128xf32> to vector<128xf32>
    %56 = vector.shape_cast %55 : vector<128xf32> to vector<1x128xf32>
    %cst_29 = arith.constant 1.000000e+01 : f32
    %57 = vector.broadcast %cst_29 : f32 to vector<1x128xf32>
    %58 = arith.divf %56, %57 : vector<1x128xf32>
    %cst_30 = arith.constant 9.99999974E-6 : f32
    %59 = vector.broadcast %cst_30 : f32 to vector<1x128xf32>
    %60 = arith.addf %58, %59 : vector<1x128xf32>
    %61 = math.rsqrt %60 : vector<1x128xf32>
    %62 = vector.broadcast %61 : vector<1x128xf32> to vector<10x128xf32>
    %63 = arith.mulf %53, %62 : vector<10x128xf32>
    %64 = vector.broadcast %46 : vector<10x1xf32> to vector<10x128xf32>
    %65 = arith.mulf %63, %64 : vector<10x128xf32>
    %66 = vector.broadcast %47 : vector<10x1xf32> to vector<10x128xf32>
    %67 = arith.addf %65, %66 : vector<10x128xf32>
    %cst_31 = arith.constant 0.000000e+00 : f32
    %68 = vector.broadcast %cst_31 : f32 to vector<10x128xf32>
    %69 = arith.maximumf %67, %68 : vector<10x128xf32>
    %c0_32 = arith.constant 0 : index
    %c0_33 = arith.constant 0 : index
    %70 = vector.load %arg10[%c0_32, %c0_33] : memref<1x10xbf16, #tpu.memory_space<vmem>>, vector<1x10xbf16>
    %71 = arith.truncf %69 : vector<10x128xf32> to vector<10x128xbf16>
    %cst_34 = arith.constant dense<0.000000e+00> : vector<1x128xf32>
    %72 = tpu.matmul %70, %71, %cst_34 {dimension_numbers = #tpu.dot_dimension_numbers<[1], [0], [0], [1], [0, 0, 1, 1], [], []>} : vector<1x10xbf16>, vector<10x128xbf16>, vector<1x128xf32> -> vector<1x128xf32>
    %c0_35 = arith.constant 0 : index
    %c0_36 = arith.constant 0 : index
    %73 = vector.load %arg11[%c0_35, %c0_36] : memref<1x1xf32, #tpu.memory_space<vmem>>, vector<1x1xf32>
    %74 = vector.broadcast %73 : vector<1x1xf32> to vector<1x128xf32>
    %75 = arith.addf %72, %74 : vector<1x128xf32>
    %c0_37 = arith.constant 0 : index
    %c0_38 = arith.constant 0 : index
    %76 = vector.load %arg12[%c0_37, %c0_38] : memref<1x128xf32, #tpu.memory_space<vmem>>, vector<1x128xf32>
    tpu.vector_store %arg12[%c0_37, %c0_38], %75 {strides = array<i32>} : memref<1x128xf32, #tpu.memory_space<vmem>>, vector<1x128xf32>,
    return
  }
  func.func @transform_0(%arg0: i32) -> (i32, i32) {
    %c0_i32 = arith.constant 0 : i32
    %c0_i32_0 = arith.constant 0 : i32
    return %arg0, %c0_i32 : i32, i32
  }
  func.func @transform_1(%arg0: i32) -> (i32, i32) {
    %c0_i32 = arith.constant 0 : i32
    %c0_i32_0 = arith.constant 0 : i32
    %c0_i32_1 = arith.constant 0 : i32
    return %c0_i32, %c0_i32_0 : i32, i32
  }
  func.func @transform_2(%arg0: i32) -> (i32, i32) {
    %c0_i32 = arith.constant 0 : i32
    %c0_i32_0 = arith.constant 0 : i32
    %c0_i32_1 = arith.constant 0 : i32
    return %c0_i32, %c0_i32_0 : i32, i32
  }
  func.func @transform_3(%arg0: i32) -> (i32, i32) {
    %c0_i32 = arith.constant 0 : i32
    %c0_i32_0 = arith.constant 0 : i32
    %c0_i32_1 = arith.constant 0 : i32
    return %c0_i32, %c0_i32_0 : i32, i32
  }
  func.func @transform_4(%arg0: i32) -> (i32, i32) {
    %c0_i32 = arith.constant 0 : i32
    %c0_i32_0 = arith.constant 0 : i32
    %c0_i32_1 = arith.constant 0 : i32
    return %c0_i32, %c0_i32_0 : i32, i32
  }
  func.func @transform_5(%arg0: i32) -> (i32, i32) {
    %c0_i32 = arith.constant 0 : i32
    %c0_i32_0 = arith.constant 0 : i32
    %c0_i32_1 = arith.constant 0 : i32
    return %c0_i32, %c0_i32_0 : i32, i32
  }
  func.func @transform_6(%arg0: i32) -> (i32, i32) {
    %c0_i32 = arith.constant 0 : i32
    %c0_i32_0 = arith.constant 0 : i32
    %c0_i32_1 = arith.constant 0 : i32
    return %c0_i32, %c0_i32_0 : i32, i32
  }
  func.func @transform_7(%arg0: i32) -> (i32, i32) {
    %c0_i32 = arith.constant 0 : i32
    %c0_i32_0 = arith.constant 0 : i32
    %c0_i32_1 = arith.constant 0 : i32
    return %c0_i32, %c0_i32_0 : i32, i32
  }
  func.func @transform_8(%arg0: i32) -> (i32, i32) {
    %c0_i32 = arith.constant 0 : i32
    %c0_i32_0 = arith.constant 0 : i32
    %c0_i32_1 = arith.constant 0 : i32
    return %c0_i32, %c0_i32_0 : i32, i32
  }
  func.func @transform_9(%arg0: i32) -> (i32, i32) {
    %c0_i32 = arith.constant 0 : i32
    %c0_i32_0 = arith.constant 0 : i32
    %c0_i32_1 = arith.constant 0 : i32
    return %c0_i32, %c0_i32_0 : i32, i32
  }
  func.func @transform_10(%arg0: i32) -> (i32, i32) {
    %c0_i32 = arith.constant 0 : i32
    %c0_i32_0 = arith.constant 0 : i32
    %c0_i32_1 = arith.constant 0 : i32
    return %c0_i32, %c0_i32_0 : i32, i32
  }
  func.func @transform_11(%arg0: i32) -> (i32, i32) {
    %c0_i32 = arith.constant 0 : i32
    %c0_i32_0 = arith.constant 0 : i32
    return %c0_i32, %arg0 : i32, i32
  }
}

</mosaic_0001>

<bundles_post_ra>
// kernel: tpu_custom_call.1
= control target key start
LH: loop header
LB: loop body
LE: loop exit
PB: predicated region body
PF: predicated region fallthrough
CT: control target
= control target key end

     0   :  { %s862_s0 = inlined_call_operand.vmem [shape: f32[8,100], index: 0, kind: input, shape index: {}]   ;;  %s863_s1 = inlined_call_operand.vmem [shape: bf16[20,100], index: 1, kind: input, shape index: {}]   ;;  %s864_s2 = inlined_call_operand.vmem [shape: f32[20,1], index: 2, kind: input, shape index: {}]   ;;  %s865_s3 = inlined_call_operand.vmem [shape: f32[20,1], index: 3, kind: input, shape index: {}]   ;;  %s866_s4 = inlined_call_operand.vmem [shape: f32[20,1], index: 4, kind: input, shape index: {}]   ;;  %s867_s5 = inlined_call_operand.vmem [shape: bf16[10,20], index: 5, kind: input, shape index: {}]   ;;  %s868_s6 = inlined_call_operand.vmem [shape: f32[10,1], index: 6, kind: input, shape index: {}]   ;;  %s869_s7 = inlined_call_operand.vmem [shape: f32[10,1], index: 7, kind: input, shape index: {}]   ;;  %s870_s8 = inlined_call_operand.vmem [shape: f32[10,1], index: 8, kind: input, shape index: {}]   ;;  %s871_s9 = inlined_call_operand.vmem [shape: bf16[1,10], index: 9, kind: input, shape index: {}]   ;;  %s872_s10 = inlined_call_operand.<no memory space> [shape: f32[1,1], index: 10, kind: input, shape index: {}]   ;;  %s873_s11 = inlined_call_operand.hbm [shape: f32[1,128], index: 11, kind: output, shape index: {}]  }
   0x1   :  { %v16_v0 = vstv %s872_s10 }
   0x2   :  { %17 = vst [vmem:[#allocation2] sm:$0x1] %v16_v0 }
   0x3   :  { %v56_v1 = vld [vmem:[%s862_s0 + $0x70] sm:$0xff]  ;;  %v57_v2 = vld [vmem:[%s862_s0 + $0x78] sm:$0xff]  ;;  %v58_v3 = vlaneseq  ;;  %v54_v4 = vld [vmem:[%s862_s0 + $0x60] sm:$0xff]  ;;  %v620_v11 = vmov 0   ;;  %vm162_vm1 = vcmask 818176  }
   0x4   :  { %v74_v5 = vfloor.f32 %v56_v1  ;;  %v75_v6 = vfloor.f32 %v57_v2  ;;  %v55_v7 = vld [vmem:[%s862_s0 + $0x68] sm:$0xff]  ;;  %v72_v8 = vfloor.f32 %v54_v4  ;;  %v52_v9 = vld [vmem:[%s862_s0 + $0x50] sm:$0xff]  ;;  %v53_v10 = vld [vmem:[%s862_s0 + $0x58] sm:$0xff]  ;;  %589 = vset.pattern.permute.xlu0 %v620_v11  ;;  %590 = vset.pattern.permute.xlu1 %v620_v11 }
   0x5   :  { %v706_v12 = vand.u32 127, %v58_v3  ;;  %v73_v13 = vfloor.f32 %v55_v7  ;;  %v70_v14 = vfloor.f32 %v52_v9  ;;  %v71_v15 = vfloor.f32 %v53_v10  ;;  %v50_v25 = vld [vmem:[%s862_s0 + $0x40] sm:$0xff]  ;;  %v51_v28 = vld [vmem:[%s862_s0 + $0x48] sm:$0xff]  ;;  %v138_v36 = vld [vmem:[%s864_s2 + $0x10] sm:$0xf] }
   0x6   :  { %v90_v16 = vmax.f32 %v74_v5, 0.0  ;;  %v91_v17 = vmax.f32 %v75_v6, 0.0  ;;  %v88_v18 = vmax.f32 %v72_v8, 0.0  ;;  %v591_v26 = vld [vmem:[%s863_s1] sm:$0xff]   ;;  %v68_v35 = vfloor.f32 %v50_v25  ;;  %v137_v41 = vld [vmem:[%s864_s2 + $0x8] sm:$0xff]  ;;  %151 = vperm.xlu1 %590, %v138_v36   ;;  %v48_v48 = vld [vmem:[%s862_s0 + $0x30] sm:$0xff] }
   0x7   :  { %vm108_vm0 = vcmp.lt.s32.totalorder %v706_v12, 10  ;;  %v89_v19 = vmax.f32 %v73_v13, 0.0  ;;  %v86_v20 = vmax.f32 %v70_v14, 0.0  ;;  %v87_v24 = vmax.f32 %v71_v15, 0.0  ;;  %559 = vmatprep.mubr.msk.bf16.mxu0 %vm162_vm1, %v591_v26  ;;  %v136_v32 = vld [vmem:[%s864_s2] sm:$0xff]  ;;  %v49_v50 = vld [vmem:[%s862_s0 + $0x38] sm:$0xff] }
   0x8   :  { %v106_v21 = vmin.f32 %v90_v16, 1.0  ;;  %v107_v22 = vmin.f32 %v91_v17, 1.0  ;;  %v104_v23 = vmin.f32 %v88_v18, 1.0  ;;  %141 = vperm.xlu0 %589, %v136_v32   ;;  %v69_v40 = vfloor.f32 %v51_v28  ;;  %v243_v43 = vld [vmem:[%s865_s3 + $0x10] sm:$0xf]  ;;  %v241_v51 = vld [vmem:[%s865_s3] sm:$0xff] }
   0x9   :  { %v105_v27 = vmin.f32 %v89_v19, 1.0  ;;  %v102_v38 = vmin.f32 %v86_v20, 1.0  ;;  %v103_v39 = vmin.f32 %v87_v24, 1.0  ;;  %v84_v46 = vmax.f32 %v68_v35, 0.0  ;;  %v246_v49 = vld [vmem:[%s866_s4 + $0x10] sm:$0xf] }
   0xa   :  { %v123_v29 = vsel %vm108_vm0, %v106_v21, %v56_v1  ;;  %v124_v30 = vsel %vm108_vm0, %v107_v22, %v57_v2  ;;  %v121_v31 = vsel %vm108_vm0, %v104_v23, %v54_v4  ;;  %v85_v47 = vmax.f32 %v69_v40, 0.0  ;;  %292 = vperm.xlu1 %590, %v243_v43  }
   0xb   :  { %v132_v33 = vpack.c.bf16 %v124_v30, %v123_v29  ;;  %v122_v34 = vsel %vm108_vm0, %v105_v27, %v55_v7  ;;  %v119_v44 = vsel %vm108_vm0, %v102_v38, %v52_v9  ;;  %v120_v45 = vsel %vm108_vm0, %v103_v39, %v53_v10 }
   0xc   :  { %v131_v37 = vpack.c.bf16 %v122_v34, %v121_v31  ;;  %146 = vperm.xlu0 %589, %v137_v41   ;;  %v130_v53 = vpack.c.bf16 %v120_v45, %v119_v44 }
   0xd   :  { %577 = vmatprep.subr.msk.bf16.mxu0 %vm162_vm1, %v132_v33  ;;  %v191_v42 = vsel %vm162_vm1, %v132_v33, 0 }
   0xe   :  { %544 = vmatpush3.bf16.xpose.msra.mxu0 %v191_v42  ;;  %v188_v52 = vsel %vm162_vm1, %v131_v37, 0 }
   0xf   :  { %578 = vmatprep.subr.msk.bf16.mxu0 %vm162_vm1, %v131_v37 }
  0x10   :  { %310 = vperm.xlu0 %589, %v246_v49  }
  0x11   :  { %18 = vsyncpa [#allocation4], 0  ;;  %v100_v54 = vmin.f32 %v84_v46, 1.0  ;;  %v101_v55 = vmin.f32 %v85_v47, 1.0  ;;  %v66_v56 = vfloor.f32 %v48_v48  ;;  %v67_v57 = vfloor.f32 %v49_v50  ;;  %v242_v58 = vld [vmem:[%s865_s3 + $0x8] sm:$0xff]  ;;  %282 = vperm.xlu1 %590, %v241_v51   ;;  %v244_v59 = vld [vmem:[%s866_s4] sm:$0xff] }
  0x12   :  { %v245_v0 = vld [vmem:[%s866_s4 + $0x8] sm:$0xff]  ;;  %v46_v1 = vld [vmem:[%s862_s0 + $0x20] sm:$0xff]  ;;  %v185_v5 = vsel %vm162_vm1, %v130_v53, 0  ;;  %v44_v19 = vld [vmem:[%s862_s0 + $0x10] sm:$0xff]  ;;  %vm622_vm2 = vmmov 0   ;;  %vm248_vm3 = vcmask 1043456  }
  0x13   :  { %v117_v60 = vsel %vm108_vm0, %v100_v54, %v50_v25  ;;  %v118_v61 = vsel %vm108_vm0, %v101_v55, %v51_v28  ;;  %v82_v62 = vmax.f32 %v66_v56, 0.0  ;;  %v83_v63 = vmax.f32 %v67_v57, 0.0  ;;  %v47_v2 = vld [vmem:[%s862_s0 + $0x28] sm:$0xff]  ;;  %v323_v11 = vld [vmem:[%s868_s6] sm:$0xff]  ;;  %v45_v20 = vld [vmem:[%s862_s0 + $0x18] sm:$0xff]  ;;  %s623_s18 = smov [#allocation3]  }
  0x14   :  { %287 = vperm.xlu0 %589, %v242_v58   ;;  %v324_v4 = vld [vmem:[%s868_s6 + $0x8] sm:$0x3]  ;;  %v129_v6 = vpack.c.bf16 %v118_v61, %v117_v60  ;;  %v64_v9 = vfloor.f32 %v46_v1  ;;  %v65_v10 = vfloor.f32 %v47_v2  ;;  %v389_v13 = vld [vmem:[%s869_s7] sm:$0xff]  ;;  %v62_v26 = vfloor.f32 %v44_v19  ;;  %s513_s19 = sshll.u32 %s623_s18, 4  ;;  %s514_s19 = int_to_ptr.vmem [resolvable:$true] %s513_s19 }
  0x15   :  { %300 = vperm.xlu1 %590, %v244_v59   ;;  %v98_v7 = vmin.f32 %v82_v62, 1.0  ;;  %v99_v8 = vmin.f32 %v83_v63, 1.0  ;;  %v390_v18 = vld [vmem:[%s869_s7 + $0x8] sm:$0x3]  ;;  %v391_v21 = vld [vmem:[%s870_s8] sm:$0xff]  ;;  %v63_v27 = vfloor.f32 %v45_v20  ;;  %v621_v56 = vmov 0.0   ;;  %p603_p1 = scmp.lt.s32.totalorder %s514_s19, %s514_s19 }
  0x16   :  { %546 = vmatpush3.bf16.xpose.msra.mxu0 %v188_v52  ;;  %v80_v16 = vmax.f32 %v64_v9, 0.0  ;;  %v81_v17 = vmax.f32 %v65_v10, 0.0  ;;  %v182_v22 = vsel %vm162_vm1, %v129_v6, 0  ;;  %v392_v28 = vld [vmem:[%s870_s8 + $0x8] sm:$0x3]  ;;  %v78_v32 = vmax.f32 %v62_v26, 0.0  ;;  %563 = vmatprep.subr.bf16.mxu1 %v621_v56 }
  0x17   :  { %579 = vmatprep.subr.msk.bf16.mxu0 %vm162_vm1, %v130_v53  ;;  %v115_v14 = vsel %vm108_vm0, %v98_v7, %v48_v48  ;;  %v116_v15 = vsel %vm108_vm0, %v99_v8, %v49_v50  ;;  %v448_v29 = vld [vmem:[#allocation2] sm:$0x1]  ;;  %v79_v33 = vmax.f32 %v63_v27, 0.0  ;;  %v43_v35 = vld [vmem:[%s862_s0 + $0x8] sm:$0xff]  ;;  %567 = vmatprep.mubr.msk.bf16.mxu1 %vm622_vm2, %v621_v56  ;;  %vm344_vm4 = vcmask 1041408   ;;  %s598_s20 = scalar_lea.vmem %s514_s19, 16 }
  0x18   :  { %305 = vperm.xlu0 %589, %v245_v0   ;;  %v128_v23 = vpack.c.bf16 %v116_v15, %v115_v14  ;;  %v96_v24 = vmin.f32 %v80_v16, 1.0  ;;  %v97_v25 = vmin.f32 %v81_v17, 1.0  ;;  %v42_v34 = vld [vmem:[%s862_s0] sm:$0xff]  ;;  %v94_v38 = vmin.f32 %v78_v32, 1.0  ;;  %p599_p0 = scmp.ne.s32.totalorder %s514_s19, %s598_s20  ;;  %s602_s21 = scalar_lea.vmem %s514_s19, 32 }
  0x19   :  { %332 = vperm.xlu1 %590, %v324_v4   ;;  %v95_v39 = vmin.f32 %v79_v33, 1.0  ;;  %v60_v40 = vfloor.f32 %v42_v34  ;;  %v61_v41 = vfloor.f32 %v43_v35  ;;  %v592_v55 = vld [vmem:[%s863_s1 + $0x8] ss:$0 sps:$4 sm:$0x33]   ;;  %vm340_vm5 = vcmask 162816   ;;  %p604_p2 = scmp.lt.s32.totalorder %s602_s21, %s598_s20 }
  0x1a   :  { %v113_v30 = vsel %vm108_vm0, %v96_v24, %v46_v1  ;;  %v114_v31 = vsel %vm108_vm0, %v97_v25, %v47_v2  ;;  %v179_v36 = vsel %vm162_vm1, %v128_v23, 0  ;;  %v111_v42 = vsel %vm108_vm0, %v94_v38, %v44_v19 }
  0x1b   :  { %v127_v37 = vpack.c.bf16 %v114_v31, %v113_v30  ;;  %v112_v43 = vsel %vm108_vm0, %v95_v39, %v45_v20  ;;  %v76_v44 = vmax.f32 %v60_v40, 0.0  ;;  %v77_v45 = vmax.f32 %v61_v41, 0.0  ;;  %p605_p3 = por %p604_p2, %p603_p1 }
  0x1c   :  { %327 = vperm.xlu0 %589, %v323_v11   ;;  %v126_v47 = vpack.c.bf16 %v112_v43, %v111_v42  ;;  %vm462_vm6 = vcmask 1044480   ;;  %vm458_vm7 = vcmask 80896  }
  0x1d   :  { %422 = vperm.xlu1 %590, %v389_v13   ;;  %v176_v46 = vsel %vm162_vm1, %v127_v37, 0  ;;  %v92_v48 = vmin.f32 %v76_v44, 1.0  ;;  %v93_v49 = vmin.f32 %v77_v45, 1.0  ;;  %p606_p4 = pnand %p605_p3, %p599_p0 }
  0x1e   :  { %548 = vmatpush3.bf16.xpose.msra.mxu0 %v185_v5  ;;  %v173_v52 = vsel %vm162_vm1, %v126_v47, 0 }
  0x1f   :  { %580 = vmatprep.subr.msk.bf16.mxu0 %vm162_vm1, %v129_v6  ;;  %v109_v50 = vsel %vm108_vm0, %v92_v48, %v42_v34  ;;  %v110_v51 = vsel %vm108_vm0, %v93_v49, %v43_v35 }
  0x20   :  { %427 = vperm.xlu0 %589, %v390_v18   ;;  %v125_v53 = vpack.c.bf16 %v110_v51, %v109_v50 }
  0x21   :  { %434 = vperm.xlu1 %590, %v391_v21  }
  0x22   :  { %v170_v54 = vsel %vm162_vm1, %v125_v53, 0 }
  0x24   :  { %439 = vperm.xlu0 %589, %v392_v28  }
  0x25   :  { %451 = vperm.xlu1 %590, %v448_v29  }
  0x26   :  { %550 = vmatpush3.bf16.xpose.msra.mxu0 %v182_v22 }
  0x27   :  { %581 = vmatprep.subr.msk.bf16.mxu0 %vm162_vm1, %v128_v23 }
  0x2e   :  { %552 = vmatpush3.bf16.xpose.msra.mxu0 %v179_v36 }
  0x2f   :  { %582 = vmatprep.subr.msk.bf16.mxu0 %vm162_vm1, %v127_v37 }
  0x36   :  { %554 = vmatpush3.bf16.xpose.msra.mxu0 %v176_v46 }
  0x37   :  { %583 = vmatprep.subr.msk.bf16.mxu0 %vm162_vm1, %v126_v47 }
  0x3e   :  { %556 = vmatpush3.bf16.xpose.msra.mxu0 %v173_v52 }
  0x3f   :  { %584 = vmatprep.subr.msk.bf16.mxu0 %vm162_vm1, %v125_v53  ;;  %v593_v53 = vld [vmem:[%s867_s5] sm:$0x1f]  }
  0x46   :  { %558 = vmatpush3.bf16.xpose.msra.mxu0 %v170_v54 }
  0x4d   :  { %560 = vmatmul.mubr.msk.bf16.vlgmr.msra.gmra.mxu0 %vm162_vm1, %v592_v55 }
  0x81   :  { %v152_v60 = vpop.permute.xlu1 %151 }
  0x83   :  { %v142_v12 = vpop.permute.xlu0 %141 }
  0x85   :  { %v293_v32 = vpop.permute.xlu1 %292 }
  0x87   :  { %v147_v61 = vpop.permute.xlu0 %146 }
  0x8b   :  { %v311_v31 = vpop.permute.xlu0 %310 }
  0x8c   :  { %v283_v34 = vpop.permute.xlu1 %282 }
  0x8f   :  { %v288_v33 = vpop.permute.xlu0 %287 }
  0x90   :  { %v301_v43 = vpop.permute.xlu1 %300 }
  0x93   :  { %v306_v42 = vpop.permute.xlu0 %305 }
 0x10d   :  { %v561_v57 = vpop.f32.mrf.mxu0 }
 0x10e   :  { %v236_v62 = vadd.f32 %v561_v57, %v152_v60 }
 0x10f   :  { %v227_v58 = vpop.f32.mrf.mxu0 }
 0x110   :  { %v228_v0 = vadd.f32 %v227_v58, %v142_v12  ;;  %v249_v4 = vsel %vm248_vm3, %v236_v62, 0.0  ;;  %v333_v12 = vpop.permute.xlu1 %332  ;;  %v328_v58 = vpop.permute.xlu0 %327 }
 0x111   :  { %v562_v59 = vpop.f32.mrf.mxu0 }
 0x113   :  { %v230_v63 = vpop.f32.mrf.mxu0 }
 0x114   :  { %v231_v1 = vadd.f32 %v230_v63, %v147_v61 }
 0x116   :  { %v247_v2 = vadd.f32 %v231_v1, %v228_v0 }
 0x118   :  { %v250_v5 = vadd.f32 %v249_v4, %v247_v2 }
 0x11a   :  { %v251_v6 = vrot.slane %v250_v5, 4 }
 0x11c   :  { %v252_v7 = vadd.f32 %v251_v6, %v250_v5 }
 0x11e   :  { %v253_v8 = vrot.slane %v252_v7, 2 }
 0x120   :  { %v254_v9 = vadd.f32 %v253_v8, %v252_v7 }
 0x122   :  { %v255_v10 = vrot.slane %v254_v9, 1 }
 0x124   :  { %v256_v11 = vadd.f32 %v255_v10, %v254_v9 }
 0x126   :  { %v258_v13 = vmul.f32 0.05, %v256_v11 }
 0x128   :  { %v259_v14 = vsub.f32 %v228_v0, %v258_v13  ;;  %v260_v15 = vsub.f32 %v231_v1, %v258_v13  ;;  %v261_v16 = vsub.f32 %v236_v62, %v258_v13 }
 0x12a   :  { %v262_v17 = vmul.f32 %v259_v14, %v259_v14  ;;  %v263_v18 = vmul.f32 %v260_v15, %v260_v15  ;;  %v264_v19 = vmul.f32 %v261_v16, %v261_v16 }
 0x12c   :  { %v265_v20 = vadd.f32 %v263_v18, %v262_v17  ;;  %v266_v21 = vsel %vm248_vm3, %v264_v19, 0.0 }
 0x12e   :  { %v267_v22 = vadd.f32 %v266_v21, %v265_v20 }
 0x130   :  { %v268_v23 = vrot.slane %v267_v22, 4 }
 0x132   :  { %v269_v24 = vadd.f32 %v268_v23, %v267_v22  ;;  %v428_v22 = vpop.permute.xlu0 %427  ;;  %v423_v23 = vpop.permute.xlu1 %422 }
 0x134   :  { %v270_v25 = vrot.slane %v269_v24, 2 }
 0x136   :  { %v271_v26 = vadd.f32 %v270_v25, %v269_v24 }
 0x138   :  { %v272_v27 = vrot.slane %v271_v26, 1 }
 0x13a   :  { %v273_v28 = vadd.f32 %v272_v27, %v271_v26 }
 0x13c   :  { %v274_v29 = vmul.f32 0.05, %v273_v28 }
 0x13e   :  { %v275_v30 = vadd.f32 1e-05, %v274_v29  ;;  %v440_v29 = vpop.permute.xlu0 %439 }
 0x140   :  { %594 = vrsqrt.f32 %v275_v30  ;;  %v435_v30 = vpop.permute.xlu1 %434 }
 0x14d   :  { %v595_v35 = vpop.eup %594 }
 0x14e   :  { %v278_v36 = vmul.f32 %v595_v35, %v260_v15  ;;  %v279_v37 = vmul.f32 %v595_v35, %v261_v16  ;;  %v277_v38 = vmul.f32 %v595_v35, %v259_v14 }
 0x150   :  { %v296_v39 = vmul.f32 %v288_v33, %v278_v36  ;;  %v297_v40 = vmul.f32 %v293_v32, %v279_v37  ;;  %v295_v41 = vmul.f32 %v283_v34, %v277_v38  ;;  %v446_v37 = vld [vmem:[%s871_s9] sm:$0x1]  ;;  %v455_v38 = vshrl.u32 %v58_v3, 7 }
 0x152   :  { %v315_v44 = vadd.f32 %v311_v31, %v297_v40  ;;  %v313_v45 = vadd.f32 %v301_v43, %v295_v41  ;;  %v314_v46 = vadd.f32 %v306_v42, %v296_v39  ;;  %v456_v39 = vsub.s32 0, %v455_v38  ;;  %v452_v40 = vpop.permute.xlu1 %451 }
 0x154   :  { %v318_v47 = vmax.f32 %v315_v44, 0.0  ;;  %v316_v49 = vmax.f32 %v313_v45, 0.0  ;;  %v317_v50 = vmax.f32 %v314_v46, 0.0  ;;  %v457_v41 = vrot.slane %v452_v40, %v456_v39 }
 0x156   :  { %v322_v48 = vpack.c.bf16 %v318_v47, %v318_v47  ;;  %v321_v52 = vpack.c.bf16 %v317_v50, %v316_v49 }
 0x158   :  { %v346_v51 = vsel %vm344_vm4, %v322_v48, 0 }
 0x159   :  { %564 = vmatpush3.bf16.msra.mxu1 %v346_v51 }
 0x15a   :  { %565 = vmatprep.subr.bf16.mxu1 %v621_v56 }
 0x15d   :  { %566 = vmatpush3.bf16.msra.mxu1 %v321_v52 }
 0x15e   :  { %571 = vmatprep.subr.bf16.mxu1 %v621_v56 }
 0x160   :  { %568 = vmatmul.mubr.msk.bf16.vlgmr.msra.gmra.mxu1 %vm340_vm5, %v593_v53 }
 0x161   :  { %573 = vmatprep.mubr.msk.bf16.mxu1 %vm622_vm2, %v621_v56 }
 0x220   :  { %v382_v54 = vpop.f32.mrf.mxu1 }
 0x221   :  { %v383_v60 = vadd.f32 %v382_v54, %v328_v58 }
 0x222   :  { %v569_v55 = vpop.f32.mrf.mxu1 }
 0x224   :  { %v385_v57 = vpop.f32.mrf.mxu1 }
 0x225   :  { %v386_v59 = vadd.f32 %v385_v57, %v333_v12 }
 0x226   :  { %v570_v61 = vpop.f32.mrf.mxu1 }
 0x227   :  { %v393_v62 = vsel %vm344_vm4, %v386_v59, 0.0 }
 0x228   :  { %v394_v63 = vadd.f32 %v393_v62, %v383_v60 }
 0x22a   :  { %v395_v0 = vrot.slane %v394_v63, 4 }
 0x22c   :  { %v396_v1 = vadd.f32 %v395_v0, %v394_v63 }
 0x22e   :  { %v397_v2 = vrot.slane %v396_v1, 2 }
 0x230   :  { %v398_v4 = vadd.f32 %v397_v2, %v396_v1 }
 0x232   :  { %v399_v5 = vrot.slane %v398_v4, 1 }
 0x234   :  { %v400_v6 = vadd.f32 %v399_v5, %v398_v4 }
 0x236   :  { %v402_v7 = vmul.f32 0.1, %v400_v6 }
 0x238   :  { %v403_v8 = vsub.f32 %v383_v60, %v402_v7  ;;  %v404_v56 = vsub.f32 %v386_v59, %v402_v7 }
 0x23a   :  { %v405_v9 = vmul.f32 %v403_v8, %v403_v8  ;;  %v406_v10 = vmul.f32 %v404_v56, %v404_v56 }
 0x23c   :  { %v407_v11 = vsel %vm344_vm4, %v406_v10, 0.0 }
 0x23d   :  { %v408_v13 = vadd.f32 %v407_v11, %v405_v9 }
 0x23f   :  { %v409_v14 = vrot.slane %v408_v13, 4 }
 0x241   :  { %v410_v15 = vadd.f32 %v409_v14, %v408_v13 }
 0x243   :  { %v411_v16 = vrot.slane %v410_v15, 2 }
 0x245   :  { %v412_v17 = vadd.f32 %v411_v16, %v410_v15 }
 0x247   :  { %v413_v18 = vrot.slane %v412_v17, 1 }
 0x249   :  { %v414_v19 = vadd.f32 %v413_v18, %v412_v17 }
 0x24b   :  { %v415_v20 = vmul.f32 0.1, %v414_v19 }
 0x24d   :  { %v416_v21 = vadd.f32 1e-05, %v415_v20 }
 0x24f   :  { %596 = vrsqrt.f32 %v416_v21 }
 0x25c   :  { %v597_v24 = vpop.eup %596 }
 0x25d   :  { %v418_v25 = vmul.f32 %v597_v24, %v403_v8  ;;  %v419_v26 = vmul.f32 %v597_v24, %v404_v56 }
 0x25f   :  { %v431_v27 = vmul.f32 %v428_v22, %v419_v26  ;;  %v430_v28 = vmul.f32 %v423_v23, %v418_v25 }
 0x261   :  { %v442_v31 = vadd.f32 %v435_v30, %v430_v28  ;;  %v443_v32 = vadd.f32 %v440_v29, %v431_v27 }
 0x263   :  { %v444_v33 = vmax.f32 %v442_v31, 0.0  ;;  %v445_v34 = vmax.f32 %v443_v32, 0.0 }
 0x265   :  { %v447_v35 = vpack.c.bf16 %v445_v34, %v444_v33 }
 0x267   :  { %v464_v36 = vsel %vm462_vm6, %v447_v35, 0 }
 0x268   :  { %572 = vmatpush3.bf16.msra.mxu1 %v464_v36 }
 0x26b   :  { %574 = vmatmul.mubr.msk.bf16.vlgmr.msra.gmra.mxu1 %vm458_vm7, %v446_v37 }
 0x32b   :  { %v500_v42 = vpop.f32.mrf.mxu1 }
 0x32c   :  { %v501_v43 = vadd.f32 %v500_v42, %v457_v41 }
 0x32d   :  { %v575_v44 = vpop.f32.mrf.mxu1 }
 0x32e   :  { %506 = vst [vmem:[#allocation3] sm:$0x1] %v501_v43 }
 0x32f   :  { %v503_v45 = vpop.f32.mrf.mxu1 }
 0x330   :  { %609 = shalt.err (!%p606_p4)
}
 0x331   :  { %516 = dma.vmem_to_hbm [thread:$0]  %s514_s19, 16, %s873_s11, [#allocation4]   ;;  %v576_v3 = vpop.f32.mrf.mxu1 }
 0x332   :  { %618 = dma.done.wait [#allocation4], 16  }
 0x333   :  { %619 = vsyncadd [#allocation4], 4294967280 }
 0x334   :  { %520 = vsyncpa [#allocation4], 1 }

</bundles_post_ra>
